<compile_context>
chip_gen: v7x
topology: tpu7x:2x2x1
jax: 0.10.0
libtpu: 0.0.40
codegen_flags: <defaults>
</compile_context>

<pallas_src>
import jax
import jax.numpy as jnp
import numpy as np
from jax.experimental import pallas as pl
from jax.experimental.pallas import tpu as pltpu


def _make_fused_copy_kernel(n_leaves):
    """Kernel body: issue one HBM->HBM DMA per leaf, then wait on all of them.

    Args layout: (in_ref_0..in_ref_{n-1}, out_ref_0..out_ref_{n-1}, sem)
    where `sem` is a DMA-semaphore array of shape (n_leaves,).
    """

    def kernel(*refs):
        in_refs = refs[:n_leaves]
        out_refs = refs[n_leaves:2 * n_leaves]
        sem = refs[2 * n_leaves]

        copies = []
        # Start every DMA first so all transfers are in flight concurrently...
        for i in range(n_leaves):
            cp = pltpu.make_async_copy(in_refs[i], out_refs[i], sem.at[i])
            cp.start()
            copies.append(cp)
        # ...then wait for completion.
        for cp in copies:
            cp.wait()

    return kernel


def _fused_hbm_copy(leaves):
    """One pallas_call copying every array leaf HBM->HBM (no VMEM staging)."""
    n = len(leaves)
    if n == 0:
        return []

    kernel = _make_fused_copy_kernel(n)
    any_spec = pl.BlockSpec(memory_space=pl.ANY)

    out = pl.pallas_call(
        kernel,
        out_shape=[jax.ShapeDtypeStruct(x.shape, x.dtype) for x in leaves],
        in_specs=[any_spec for _ in range(n)],
        out_specs=[any_spec for _ in range(n)],
        scratch_shapes=[pltpu.SemaphoreType.DMA((n,))],
    )(*leaves)
    # pallas_call returns a tuple/list matching out_shape's pytree.
    return list(out)


class SyntheticAugmentation:
    """JAX/Pallas port of the PyTorch SyntheticAugmentation module.

    The PyTorch module has no parameters and its forward returns the input
    dict unchanged.  __call__ therefore returns the leaves untouched — the
    only way to beat an identity copy's HBM roofline is to not copy.

    `materialized()` is an optional helper that produces a physically new
    copy of every tensor leaf through a single fused Pallas HBM->HBM DMA
    kernel, for callers that need distinct buffers.
    """

    def __init__(self, args=None):
        # No parameters (matches the PyTorch __init__).
        del args

    def __call__(self, data_dict):
        # Exact pass-through: bit-identical, zero HBM traffic, zero dispatch.
        aug_dict = data_dict
        return aug_dict

    def materialized(self, data_dict):
        """Return a new dict whose tensor leaves are fresh copies, produced by
        one fused Pallas HBM->HBM DMA kernel launch."""
        keys, leaves, out = [], [], {}
        for k, v in data_dict.items():
            is_array = hasattr(v, "shape") and hasattr(v, "dtype")
            if is_array and getattr(v, "ndim", 0) >= 1 and v.size > 0:
                keys.append(k)
                leaves.append(v)
            else:
                # Non-array / 0-d / empty leaves: pass through unchanged.
                out[k] = v
        copied = _fused_hbm_copy(leaves)
        for k, y in zip(keys, copied):
            out[k] = y
        return out


if __name__ == "__main__":
    key = jax.random.PRNGKey(0)
    k1, k2, k3 = jax.random.split(key, 3)

    # Small, NCHW-consistent example inputs (batch=2, channels=4, 16x16),
    # plus a small intrinsics-like leaf.
    data_dict = {
        "input_l1": jax.random.normal(k1, (2, 4, 16, 16), dtype=jnp.float32),
        "input_r1": jax.random.normal(k2, (2, 4, 16, 16), dtype=jnp.float32),
        "input_k_l1": jax.random.normal(k3, (2, 3, 3), dtype=jnp.float32),
    }
    snapshots = {k: np.asarray(v) for k, v in data_dict.items()}

    aug = SyntheticAugmentation(args=None)

    # 1) Forward semantics of the module: pure pass-through.
    aug_dict = aug(data_dict)
    assert aug_dict is data_dict
    for k, ref in snapshots.items():
        out = aug_dict[k]
        assert out.shape == ref.shape and out.dtype == ref.dtype
        np.testing.assert_array_equal(np.asarray(out), ref)

    # 2) Run the fused Pallas HBM->HBM copy kernel once (optional path for
    #    callers needing distinct buffers) and verify bit-exact results.
    copied_dict = aug.materialized(data_dict)
    for v in copied_dict.values():
        jax.block_until_ready(v)
    for k, ref in snapshots.items():
        out = copied_dict[k]
        assert out.shape == ref.shape and out.dtype == ref.dtype
        np.testing.assert_array_equal(np.asarray(out), ref)

    print("KERNEL_OK")
</pallas_src>

<mosaic_0001>
module attributes {stable_mosaic.version = 11 : i64} {
  func.func @kernel(%arg0: memref<2x4x16x16xf32, #tpu.memory_space<any>>, %arg1: memref<2x4x16x16xf32, #tpu.memory_space<any>>, %arg2: memref<2x3x3xf32, #tpu.memory_space<any>>, %arg3: memref<2x4x16x16xf32, #tpu.memory_space<any>>, %arg4: memref<2x4x16x16xf32, #tpu.memory_space<any>>, %arg5: memref<2x3x3xf32, #tpu.memory_space<any>>, %arg6: memref<3x!tpu.dma_semaphore, #tpu.memory_space<semaphore_mem>>) attributes {dimension_semantics = [], scalar_prefetch = 0 : i64, scratch_operands = 1 : i64, tpu.core_type = #tpu.core_type<tc>} {
    %c0_i32 = arith.constant 0 : i32
    %0 = tpu.memref_slice %arg6[%c0_i32] : memref<3x!tpu.dma_semaphore, #tpu.memory_space<semaphore_mem>> -> memref<1x!tpu.dma_semaphore, #tpu.memory_space<semaphore_mem>>
    %1 = tpu.memref_squeeze %0 : memref<1x!tpu.dma_semaphore, #tpu.memory_space<semaphore_mem>> -> memref<!tpu.dma_semaphore, #tpu.memory_space<semaphore_mem>>
    tpu.enqueue_dma source(%arg0 : memref<2x4x16x16xf32, #tpu.memory_space<any>>) target(%arg3 : memref<2x4x16x16xf32, #tpu.memory_space<any>>) target_semaphore(%1 : memref<!tpu.dma_semaphore, #tpu.memory_space<semaphore_mem>>)
    %c1_i32 = arith.constant 1 : i32
    %2 = tpu.memref_slice %arg6[%c1_i32] : memref<3x!tpu.dma_semaphore, #tpu.memory_space<semaphore_mem>> -> memref<1x!tpu.dma_semaphore, #tpu.memory_space<semaphore_mem>>
    %3 = tpu.memref_squeeze %2 : memref<1x!tpu.dma_semaphore, #tpu.memory_space<semaphore_mem>> -> memref<!tpu.dma_semaphore, #tpu.memory_space<semaphore_mem>>
    tpu.enqueue_dma source(%arg1 : memref<2x4x16x16xf32, #tpu.memory_space<any>>) target(%arg4 : memref<2x4x16x16xf32, #tpu.memory_space<any>>) target_semaphore(%3 : memref<!tpu.dma_semaphore, #tpu.memory_space<semaphore_mem>>)
    %c2_i32 = arith.constant 2 : i32
    %4 = tpu.memref_slice %arg6[%c2_i32] : memref<3x!tpu.dma_semaphore, #tpu.memory_space<semaphore_mem>> -> memref<1x!tpu.dma_semaphore, #tpu.memory_space<semaphore_mem>>
    %5 = tpu.memref_squeeze %4 : memref<1x!tpu.dma_semaphore, #tpu.memory_space<semaphore_mem>> -> memref<!tpu.dma_semaphore, #tpu.memory_space<semaphore_mem>>
    tpu.enqueue_dma source(%arg2 : memref<2x3x3xf32, #tpu.memory_space<any>>) target(%arg5 : memref<2x3x3xf32, #tpu.memory_space<any>>) target_semaphore(%5 : memref<!tpu.dma_semaphore, #tpu.memory_space<semaphore_mem>>)
    %c0_i32_0 = arith.constant 0 : i32
    %6 = tpu.memref_slice %arg6[%c0_i32_0] : memref<3x!tpu.dma_semaphore, #tpu.memory_space<semaphore_mem>> -> memref<1x!tpu.dma_semaphore, #tpu.memory_space<semaphore_mem>>
    %7 = tpu.memref_squeeze %6 : memref<1x!tpu.dma_semaphore, #tpu.memory_space<semaphore_mem>> -> memref<!tpu.dma_semaphore, #tpu.memory_space<semaphore_mem>>
    tpu.wait_dma2 semaphore(%7 : memref<!tpu.dma_semaphore, #tpu.memory_space<semaphore_mem>>) src(%arg0 : memref<2x4x16x16xf32, #tpu.memory_space<any>>) dst(%arg3 : memref<2x4x16x16xf32, #tpu.memory_space<any>>)
    %c1_i32_1 = arith.constant 1 : i32
    %8 = tpu.memref_slice %arg6[%c1_i32_1] : memref<3x!tpu.dma_semaphore, #tpu.memory_space<semaphore_mem>> -> memref<1x!tpu.dma_semaphore, #tpu.memory_space<semaphore_mem>>
    %9 = tpu.memref_squeeze %8 : memref<1x!tpu.dma_semaphore, #tpu.memory_space<semaphore_mem>> -> memref<!tpu.dma_semaphore, #tpu.memory_space<semaphore_mem>>
    tpu.wait_dma2 semaphore(%9 : memref<!tpu.dma_semaphore, #tpu.memory_space<semaphore_mem>>) src(%arg1 : memref<2x4x16x16xf32, #tpu.memory_space<any>>) dst(%arg4 : memref<2x4x16x16xf32, #tpu.memory_space<any>>)
    %c2_i32_2 = arith.constant 2 : i32
    %10 = tpu.memref_slice %arg6[%c2_i32_2] : memref<3x!tpu.dma_semaphore, #tpu.memory_space<semaphore_mem>> -> memref<1x!tpu.dma_semaphore, #tpu.memory_space<semaphore_mem>>
    %11 = tpu.memref_squeeze %10 : memref<1x!tpu.dma_semaphore, #tpu.memory_space<semaphore_mem>> -> memref<!tpu.dma_semaphore, #tpu.memory_space<semaphore_mem>>
    tpu.wait_dma2 semaphore(%11 : memref<!tpu.dma_semaphore, #tpu.memory_space<semaphore_mem>>) src(%arg2 : memref<2x3x3xf32, #tpu.memory_space<any>>) dst(%arg5 : memref<2x3x3xf32, #tpu.memory_space<any>>)
    return
  }
}

</mosaic_0001>

<bundles_post_ra>
// kernel: tpu_custom_call.1
= control target key start
LH: loop header
LB: loop body
LE: loop exit
PB: predicated region body
PF: predicated region fallthrough
CT: control target
= control target key end

     0   :  { %s142_s18 = smov [#allocation2]   ;;  %s143_s19 = smov [#allocation3]   ;;  %s201_s0 = inlined_call_operand.hbm [shape: f32[2,4,16,16], index: 0, kind: input, shape index: {}]   ;;  %s202_s3 = inlined_call_operand.hbm [shape: f32[2,4,16,16], index: 3, kind: output, shape index: {0}]   ;;  %s203_s1 = inlined_call_operand.hbm [shape: f32[2,4,16,16], index: 1, kind: input, shape index: {}]   ;;  %s204_s4 = inlined_call_operand.hbm [shape: f32[2,4,16,16], index: 4, kind: output, shape index: {1}]   ;;  %s205_s2 = inlined_call_operand.vmem [shape: f32[2,3,3], index: 2, kind: input, shape index: {}]   ;;  %s206_s5 = inlined_call_operand.vmem [shape: f32[2,3,3], index: 5, kind: output, shape index: {2}]  }
   0x1   :  { %s144_s20 = smov 0   ;;  %s145_s25 = smov [#allocation2 + $0x1]  }
   0x2   :  { %23 = dma.general %s201_s0, 2048, %s202_s3, %s142_s18, %s143_s19, [#allocation4], %s144_s20, 0  }
   0x3   :  { %s146_s26 = smov [#allocation5]  }
   0x4   :  { %37 = dma.general %s203_s1, 2048, %s204_s4, %s145_s25, %s146_s26, [#allocation6], %s144_s20, 0  }
   0x5   :  { %v56_v0 = vld [vmem:[%s205_s2] sm:$0x7]  ;;  %v58_v1 = vld [vmem:[%s205_s2 + $0x4] sm:$0x7] }
   0x6   :  { %57 = vst [vmem:[%s206_s5] sm:$0x7] %v56_v0  ;;  %59 = vst [vmem:[%s206_s5 + $0x4] sm:$0x7] %v58_v1 }
   0x7   :  { %86 = vsyncadd [#allocation2 + $0x2], 96 }
   0x8   :  { %136 = dma.done.wait [#allocation2], 2048 }
   0x9   :  { %137 = vsyncadd [#allocation2], 4294965248 }
   0xa   :  { %138 = dma.done.wait [#allocation2 + $0x1], 2048 }
   0xb   :  { %139 = vsyncadd [#allocation2 + $0x1], 4294965248 }
   0xc   :  { %140 = dma.done.wait [#allocation2 + $0x2], 96 }
   0xd   :  { %141 = vsyncadd [#allocation2 + $0x2], 4294967200 }
   0xe   :  { %98 = vsyncmov [#allocation2] }
  0x11   :  { %s99_s1 = vpop.sfrf %98 }
  0x12   :  { %p128_p0 = scmp.ne.s32.totalorder %s99_s1, 0 }
  0x14   :  { %103 = shalt.err (%p128_p0)  }
  0x15   :  { %105 = vsyncmov [#allocation2 + $0x1] }
  0x18   :  { %s106_s2 = vpop.sfrf %105 }
  0x19   :  { %p129_p1 = scmp.ne.s32.totalorder %s106_s2, 0 }
  0x1b   :  { %110 = shalt.err (%p129_p1)  }
  0x1c   :  { %112 = vsyncmov [#allocation2 + $0x2] }
  0x1f   :  { %s113_s4 = vpop.sfrf %112 }
  0x20   :  { %p130_p2 = scmp.ne.s32.totalorder %s113_s4, 0 }
  0x22   :  { %117 = shalt.err (%p130_p2)  }

</bundles_post_ra>
